<compile_context>
chip_gen: v7x
topology: tpu7x:2x2x1
jax: 0.10.0
libtpu: 0.0.40
codegen_flags: <defaults>
</compile_context>

<pallas_src>
import jax
import jax.numpy as jnp
from jax import lax
from jax.experimental import pallas as pl
from jax.experimental.pallas import tpu as pltpu


def _round_up8(n: int) -> int:
    return ((n + 7) // 8) * 8


def _vmem_gather_kernel(tb: int, unroll: int):
    """Table resident in VMEM: gather rows with dynamic vector loads."""

    def kernel(ids_ref, table_ref, out_ref):
        # ids_ref   : (T_pad,) int32 in SMEM (scalar-prefetched flat token ids)
        # table_ref : (V, D)   full-array VMEM block (constant index_map)
        # out_ref   : (tb, D)  VMEM output block
        base = pl.multiple_of(pl.program_id(0) * tb, tb)

        def body(t, carry):
            tok = ids_ref[base + t]
            out_ref[pl.ds(t, 1), :] = table_ref[pl.ds(tok, 1), :]
            return carry

        lax.fori_loop(0, tb, body, jnp.int32(0), unroll=unroll)

    return kernel


def _hbm_gather_kernel(tb: int, unroll: int):
    """Table in HBM: per-row DMA gather straight into the output block."""

    def kernel(ids_ref, table_ref, out_ref, sems):
        # ids_ref   : (T_pad,) int32 in SMEM
        # table_ref : (V, D) in HBM (memory_space=pl.ANY -> manual DMA)
        # out_ref   : (tb, D) VMEM output block (DMA destination, no scratch)
        # sems      : (tb,)   DMA semaphores -- one per row, all in flight
        base = pl.multiple_of(pl.program_id(0) * tb, tb)

        # Issue every row DMA before any wait: keeps descriptor issue flowing
        # and maximizes outstanding copies (this kernel is DMA-latency bound).
        def start(t, carry):
            tok = ids_ref[base + t]
            pltpu.make_async_copy(table_ref.at[tok], out_ref.at[t],
                                  sems.at[t]).start()
            return carry

        lax.fori_loop(0, tb, start, jnp.int32(0), unroll=unroll)

        def wait(t, carry):
            pltpu.make_async_copy(table_ref.at[0], out_ref.at[t],
                                  sems.at[t]).wait()
            return carry

        lax.fori_loop(0, tb, wait, jnp.int32(0), unroll=unroll)

    return kernel


def embedding_forward(x, table, padding_idx=1, permuting=True, tracking=True,
                      tokens_per_block=256, vmem_table_limit_bytes=None):
    """x: (N, L) int token ids; table: (V, D) embedding matrix.

    Returns (fmap, lengths): fmap (N, D, L) when permuting=True, and
    lengths (N,) int32 when tracking=True, matching the PyTorch module.
    """
    N, L = x.shape
    V, D = table.shape
    T = N * L
    itemsize = jnp.dtype(table.dtype).itemsize

    # Tokens gathered per grid step: multiple of 8 (sublane rule) always, and
    # small enough that even tiny inputs give >= 2 grid steps when possible
    # (v7x shards the 'parallel' grid axis across its 2 TensorCores).
    TB = int(tokens_per_block)
    TB = min(TB, _round_up8(pl.cdiv(T, 2)))
    TB = max(8, _round_up8(TB))
    num_blocks = pl.cdiv(T, TB)
    T_pad = num_blocks * TB

    # Flatten ids; clamp like jnp.take (note: torch would raise on OOB ids,
    # here they are silently remapped).  Padded tail tokens gather row 0 and
    # are sliced off below (tiny, once-per-call waste).
    ids = jnp.clip(x.reshape(T).astype(jnp.int32), 0, V - 1)
    if T_pad != T:
        ids = jnp.pad(ids, (0, T_pad - T), constant_values=0)
    # TODO(synk): for very large N*L (>= ~64K tokens) the scalar-prefetched 1-D
    # SMEM id array should become a per-block SMEM-tiled input to bound SMEM.

    table_bytes = V * D * itemsize
    out_block_bytes = TB * D * itemsize

    if vmem_table_limit_bytes is None:
        try:
            vmem_cap = int(pltpu.get_tpu_info().vmem_capacity_bytes)
        except Exception:
            vmem_cap = 64 << 20                      # conservative (v7x) fallback
        vmem_table_limit_bytes = vmem_cap // 4       # ~32 MiB v5e/v6e, ~16 MiB v7x

    cost = pl.CostEstimate(
        flops=0, transcendentals=0,
        bytes_accessed=int(2 * T_pad * D * itemsize + 4 * T_pad))

    unroll = min(8, TB)
    out_shape = jax.ShapeDtypeStruct((T_pad, D), table.dtype)
    out_spec = pl.BlockSpec((TB, D), lambda b, ids_smem: (b, 0))

    if table_bytes <= vmem_table_limit_bytes:
        # --- VMEM-resident table fast path ---------------------------------
        cp_kwargs = dict(dimension_semantics=("parallel",))
        need = 2 * table_bytes + 2 * out_block_bytes + (2 << 20)
        if need > (16 << 20):                        # above v5e scoped default
            cp_kwargs["vmem_limit_bytes"] = int(need + (4 << 20))
        gathered = pl.pallas_call(
            _vmem_gather_kernel(TB, unroll),
            out_shape=out_shape,
            grid_spec=pltpu.PrefetchScalarGridSpec(
                num_scalar_prefetch=1,               # ids -> SMEM
                grid=(num_blocks,),
                in_specs=[pl.BlockSpec((V, D), lambda b, ids_smem: (0, 0))],
                out_specs=out_spec,
            ),
            compiler_params=pltpu.CompilerParams(**cp_kwargs),
            cost_estimate=cost,
        )(ids, table)
    else:
        # --- HBM DMA-gather path (large vocabularies) -----------------------
        gathered = pl.pallas_call(
            _hbm_gather_kernel(TB, unroll),
            out_shape=out_shape,
            grid_spec=pltpu.PrefetchScalarGridSpec(
                num_scalar_prefetch=1,               # ids -> SMEM
                grid=(num_blocks,),
                in_specs=[pl.BlockSpec(memory_space=pl.ANY)],  # table in HBM
                out_specs=out_spec,
                scratch_shapes=[pltpu.SemaphoreType.DMA((TB,))],
            ),
            compiler_params=pltpu.CompilerParams(
                dimension_semantics=("parallel",)),
            cost_estimate=cost,
        )(ids, table)

    emb = gathered[:T].reshape(N, L, D)                          # (N, L, D)
    fmap = jnp.transpose(emb, (0, 2, 1)) if permuting else emb   # (N, D, L)

    if tracking:
        lengths = jnp.sum(x != padding_idx, axis=1).astype(jnp.int32)
        return fmap, lengths
    return fmap


if __name__ == "__main__":
    key = jax.random.PRNGKey(0)
    k_tab, k_ids = jax.random.split(key)

    # Small, deterministic synthetic setup (stand-in for vocab.embedding).
    V, D = 16, 32          # vocab size, embedding dim
    N, L = 2, 8            # batch, sequence length
    padding_idx = 1

    table = jax.random.normal(k_tab, (V, D), dtype=jnp.float32)
    ids = jax.random.randint(k_ids, (N, L), 0, V, dtype=jnp.int32)
    # force some padding tokens so the length tracking is exercised
    ids = ids.at[0, 6:].set(padding_idx)
    ids = ids.at[1, 3:].set(padding_idx)

    # Reference: plain JAX gather + permute + length count.
    ref_fmap = jnp.take(table, ids, axis=0).transpose(0, 2, 1)   # (N, D, L)
    ref_len = jnp.sum(ids != padding_idx, axis=1).astype(jnp.int32)

    # Path 1: auto dispatch (tiny table -> VMEM-resident fast path).
    fmap, lengths = embedding_forward(ids, table, padding_idx=padding_idx)
    # Path 2: force the HBM DMA-gather path (the production large-vocab path).
    fmap_hbm, lengths_hbm = embedding_forward(
        ids, table, padding_idx=padding_idx, vmem_table_limit_bytes=0)
    jax.block_until_ready((fmap, lengths, fmap_hbm, lengths_hbm))

    assert fmap.shape == (N, D, L) and fmap.dtype == jnp.float32
    assert fmap_hbm.shape == (N, D, L) and fmap_hbm.dtype == jnp.float32
    assert lengths.shape == (N,) and lengths.dtype == jnp.int32
    assert jnp.allclose(fmap, ref_fmap, atol=1e-6)
    assert jnp.allclose(fmap_hbm, ref_fmap, atol=1e-6)
    assert jnp.array_equal(lengths, ref_len)
    assert jnp.array_equal(lengths_hbm, ref_len)

    # TODO(synk): torch's padding_idx/freeze only affect gradients (row zeroed
    # on backward / weights frozen); forward parity needs nothing extra here.

    print("KERNEL_OK")
</pallas_src>

<mosaic_0001>
module attributes {stable_mosaic.version = 11 : i64} {
  func.func @kernel(%arg0: i32, %arg1: memref<16xi32, #tpu.memory_space<smem>>, %arg2: memref<16x32xf32, #tpu.memory_space<vmem>>, %arg3: memref<8x32xf32, #tpu.memory_space<vmem>>) attributes {dimension_semantics = [#tpu.dimension_semantics<parallel>], iteration_bounds = array<i64: 2>, scalar_prefetch = 1 : i64, scratch_operands = 0 : i64, tpu.core_type = #tpu.core_type<tc>, window_params = [{pipeline_mode = #tpu.pipeline_mode<synchronous>, transform_indices = @transform_0, window_bounds = array<i64: 16, 32>}, {transform_indices = @transform_1, window_bounds = array<i64: 8, 32>}]} {
    %c8_i32 = arith.constant 8 : i32
    %0 = arith.muli %arg0, %c8_i32 : i32
    %1 = tpu.assume_multiple %0, 8 : i32
    %c0_i32 = arith.constant 0 : i32
    %2 = arith.addi %1, %c0_i32 : i32
    %3 = arith.index_cast %2 : i32 to index
    %4 = memref.load %arg1[%3] : memref<16xi32, #tpu.memory_space<smem>>
    %5 = arith.index_cast %4 : i32 to index
    %c0 = arith.constant 0 : index
    %6 = vector.load %arg2[%5, %c0] : memref<16x32xf32, #tpu.memory_space<vmem>>, vector<1x32xf32>
    %7 = arith.index_cast %c0_i32 : i32 to index
    %c0_0 = arith.constant 0 : index
    %8 = vector.load %arg3[%7, %c0_0] : memref<8x32xf32, #tpu.memory_space<vmem>>, vector<1x32xf32>
    tpu.vector_store %arg3[%7, %c0_0], %6 {strides = array<i32>} : memref<8x32xf32, #tpu.memory_space<vmem>>, vector<1x32xf32>,
    %c1_i32 = arith.constant 1 : i32
    %9 = arith.addi %1, %c1_i32 : i32
    %10 = arith.index_cast %9 : i32 to index
    %11 = memref.load %arg1[%10] : memref<16xi32, #tpu.memory_space<smem>>
    %12 = arith.index_cast %11 : i32 to index
    %c0_1 = arith.constant 0 : index
    %13 = vector.load %arg2[%12, %c0_1] : memref<16x32xf32, #tpu.memory_space<vmem>>, vector<1x32xf32>
    %14 = arith.index_cast %c1_i32 : i32 to index
    %c0_2 = arith.constant 0 : index
    %15 = vector.load %arg3[%14, %c0_2] : memref<8x32xf32, #tpu.memory_space<vmem>>, vector<1x32xf32>
    tpu.vector_store %arg3[%14, %c0_2], %13 {strides = array<i32>} : memref<8x32xf32, #tpu.memory_space<vmem>>, vector<1x32xf32>,
    %c2_i32 = arith.constant 2 : i32
    %16 = arith.addi %1, %c2_i32 : i32
    %17 = arith.index_cast %16 : i32 to index
    %18 = memref.load %arg1[%17] : memref<16xi32, #tpu.memory_space<smem>>
    %19 = arith.index_cast %18 : i32 to index
    %c0_3 = arith.constant 0 : index
    %20 = vector.load %arg2[%19, %c0_3] : memref<16x32xf32, #tpu.memory_space<vmem>>, vector<1x32xf32>
    %21 = arith.index_cast %c2_i32 : i32 to index
    %c0_4 = arith.constant 0 : index
    %22 = vector.load %arg3[%21, %c0_4] : memref<8x32xf32, #tpu.memory_space<vmem>>, vector<1x32xf32>
    tpu.vector_store %arg3[%21, %c0_4], %20 {strides = array<i32>} : memref<8x32xf32, #tpu.memory_space<vmem>>, vector<1x32xf32>,
    %c3_i32 = arith.constant 3 : i32
    %23 = arith.addi %1, %c3_i32 : i32
    %24 = arith.index_cast %23 : i32 to index
    %25 = memref.load %arg1[%24] : memref<16xi32, #tpu.memory_space<smem>>
    %26 = arith.index_cast %25 : i32 to index
    %c0_5 = arith.constant 0 : index
    %27 = vector.load %arg2[%26, %c0_5] : memref<16x32xf32, #tpu.memory_space<vmem>>, vector<1x32xf32>
    %28 = arith.index_cast %c3_i32 : i32 to index
    %c0_6 = arith.constant 0 : index
    %29 = vector.load %arg3[%28, %c0_6] : memref<8x32xf32, #tpu.memory_space<vmem>>, vector<1x32xf32>
    tpu.vector_store %arg3[%28, %c0_6], %27 {strides = array<i32>} : memref<8x32xf32, #tpu.memory_space<vmem>>, vector<1x32xf32>,
    %c4_i32 = arith.constant 4 : i32
    %30 = arith.addi %1, %c4_i32 : i32
    %31 = arith.index_cast %30 : i32 to index
    %32 = memref.load %arg1[%31] : memref<16xi32, #tpu.memory_space<smem>>
    %33 = arith.index_cast %32 : i32 to index
    %c0_7 = arith.constant 0 : index
    %34 = vector.load %arg2[%33, %c0_7] : memref<16x32xf32, #tpu.memory_space<vmem>>, vector<1x32xf32>
    %35 = arith.index_cast %c4_i32 : i32 to index
    %c0_8 = arith.constant 0 : index
    %36 = vector.load %arg3[%35, %c0_8] : memref<8x32xf32, #tpu.memory_space<vmem>>, vector<1x32xf32>
    tpu.vector_store %arg3[%35, %c0_8], %34 {strides = array<i32>} : memref<8x32xf32, #tpu.memory_space<vmem>>, vector<1x32xf32>,
    %c5_i32 = arith.constant 5 : i32
    %37 = arith.addi %1, %c5_i32 : i32
    %38 = arith.index_cast %37 : i32 to index
    %39 = memref.load %arg1[%38] : memref<16xi32, #tpu.memory_space<smem>>
    %40 = arith.index_cast %39 : i32 to index
    %c0_9 = arith.constant 0 : index
    %41 = vector.load %arg2[%40, %c0_9] : memref<16x32xf32, #tpu.memory_space<vmem>>, vector<1x32xf32>
    %42 = arith.index_cast %c5_i32 : i32 to index
    %c0_10 = arith.constant 0 : index
    %43 = vector.load %arg3[%42, %c0_10] : memref<8x32xf32, #tpu.memory_space<vmem>>, vector<1x32xf32>
    tpu.vector_store %arg3[%42, %c0_10], %41 {strides = array<i32>} : memref<8x32xf32, #tpu.memory_space<vmem>>, vector<1x32xf32>,
    %c6_i32 = arith.constant 6 : i32
    %44 = arith.addi %1, %c6_i32 : i32
    %45 = arith.index_cast %44 : i32 to index
    %46 = memref.load %arg1[%45] : memref<16xi32, #tpu.memory_space<smem>>
    %47 = arith.index_cast %46 : i32 to index
    %c0_11 = arith.constant 0 : index
    %48 = vector.load %arg2[%47, %c0_11] : memref<16x32xf32, #tpu.memory_space<vmem>>, vector<1x32xf32>
    %49 = arith.index_cast %c6_i32 : i32 to index
    %c0_12 = arith.constant 0 : index
    %50 = vector.load %arg3[%49, %c0_12] : memref<8x32xf32, #tpu.memory_space<vmem>>, vector<1x32xf32>
    tpu.vector_store %arg3[%49, %c0_12], %48 {strides = array<i32>} : memref<8x32xf32, #tpu.memory_space<vmem>>, vector<1x32xf32>,
    %c7_i32 = arith.constant 7 : i32
    %51 = arith.addi %1, %c7_i32 : i32
    %52 = arith.index_cast %51 : i32 to index
    %53 = memref.load %arg1[%52] : memref<16xi32, #tpu.memory_space<smem>>
    %54 = arith.index_cast %53 : i32 to index
    %c0_13 = arith.constant 0 : index
    %55 = vector.load %arg2[%54, %c0_13] : memref<16x32xf32, #tpu.memory_space<vmem>>, vector<1x32xf32>
    %56 = arith.index_cast %c7_i32 : i32 to index
    %c0_14 = arith.constant 0 : index
    %57 = vector.load %arg3[%56, %c0_14] : memref<8x32xf32, #tpu.memory_space<vmem>>, vector<1x32xf32>
    tpu.vector_store %arg3[%56, %c0_14], %55 {strides = array<i32>} : memref<8x32xf32, #tpu.memory_space<vmem>>, vector<1x32xf32>,
    %c8_i32_15 = arith.constant 8 : i32
    return
  }
  func.func @transform_0(%arg0: i32, %arg1: memref<16xi32, #tpu.memory_space<smem>>) -> (i32, i32) {
    %c0_i32 = arith.constant 0 : i32
    %c0_i32_0 = arith.constant 0 : i32
    %c0_i32_1 = arith.constant 0 : i32
    return %c0_i32, %c0_i32_0 : i32, i32
  }
  func.func @transform_1(%arg0: i32, %arg1: memref<16xi32, #tpu.memory_space<smem>>) -> (i32, i32) {
    %c0_i32 = arith.constant 0 : i32
    %c0_i32_0 = arith.constant 0 : i32
    return %arg0, %c0_i32 : i32, i32
  }
}

</mosaic_0001>

<bundles_post_ra>
// kernel: tpu_custom_call.1
= control target key start
LH: loop header
LB: loop body
LE: loop exit
PB: predicated region body
PF: predicated region fallthrough
CT: control target
= control target key end

     0   :  { %s584_s0 = inlined_call_operand.hbm [shape: s32[16], index: 0, kind: input, shape index: {}]   ;;  %s585_s1 = inlined_call_operand.hbm [shape: f32[16,32], index: 1, kind: input, shape index: {}]   ;;  %s586_s2 = inlined_call_operand.hbm [shape: f32[16,32], index: 2, kind: output, shape index: {}]  }
   0x1   :  { %s301_s11 = scalar_lea.hbm %s584_s0, 16 }
   0x2   :  { %p302_p0 = scmp.ne.s32.totalorder %s584_s0, %s301_s11  ;;  %p305_p1 = scmp.lt.u32.totalorder %s301_s11, %s584_s0 }
   0x4   :  { %p307_p2 = pnand %p305_p1, %p302_p0 }
   0x6   :  { %310 = shalt.err (!%p307_p2)  }
   0x7   :  { %s409_s16 = smov [#allocation3]  }
   0x8   :  { %8 = dma.hbm_to_smem %s584_s0, 16, %s409_s16, [#allocation2] }
   0x9   :  { %383 = dma.done.wait [#allocation2], 16 }
   0xa   :  { %384 = vsyncadd [#allocation2], 4294967280 }
   0xb   :  { %10 = sfence }
   0xc   :  { %11 = vsyncpa [#allocation5], 0 }
   0xd   :  { %12 = vsyncpa [#allocation6], 0 }
   0xe   :  { %14 = vsyncpa [#allocation6 + $0x1], 0  ;;  %s441_s19 = smov 0   ;;  %s443_s20 = smov 0  }
   0xf   :  { %s445_s21 = smov 0   ;;  %s447_s22 = smov 0  }
  0x10 LB: > { %s462_s0 = sadd.s32 4294967295, %s407_s22   ;;  %s237_s23 = sadd.s32 4294967294, %s407_s22   ;;  %s407_s22 = sphi %s447_s22, %s602_s22   ;;  %s403_s21 = sphi %s445_s21, %s601_s21   ;;  %s399_s20 = sphi %s443_s20, %s600_s20   ;;  %s395_s19 = sphi %s441_s19, %s599_s19  }
  0x11   : > { %s466_s24 = sadd.s32 1, %s407_s22   ;;  %s48_s25 = sadd.s32 1, %s403_s21 }
  0x12   : > { %s45_s26 = ssub.s32 %s407_s22, %s466_s24  ;;  %p58_p3 = scmp.ne.s32.totalorder %s403_s21, %s399_s20 }
  0x13   : > { %p46_p4 = scmp.eq.s32.totalorder %s45_s26, 0  ;;  %p59_p5 = scmp.eq.s32.totalorder %s462_s0, 1 }
  0x14   : > { %p64_p6 = scmp.ne.s32.totalorder %s399_s20, %s395_s19  ;;  %p65_p7 = scmp.eq.s32.totalorder %s237_s23, 1 }
  0x15   : > { %s477_s27 = scalar_select %p46_p4, %s403_s21, %s48_s25  }
  0x16   : > { %p479_p8 = por %p59_p5, %p58_p3  ;;  %p483_p9 = por %p65_p7, %p64_p6 }
  0x17   : > { %p238_p10 = scmp.ge.s32.totalorder %s407_s22, 1  ;;  %p72_p11 = scmp.lt.s32.totalorder %s407_s22, 3 }
  0x18   : > { %s590_s28 = scalar_select %p479_p8, 1, 0 }
  0x19   : > { %s591_s29 = scalar_select %p483_p9, 1, 0 }
  0x1a   : > { %p587_p12 = scmp.eq.s32.totalorder %s462_s0, 0  ;;  %p490_p13 = pnand %p238_p10, %p72_p11 }
  0x1b   : > { %s410_s3 = smov [#allocation4]   ;;  %s311_s8 = scalar_lea.hbm %s585_s1, 256 }
  0x1c   : > { %s592_s30 = scalar_select %p490_p13, 1, 0 }
  0x1d   : > { %s84_s4 = sshll.u32 %s410_s3, 4  ;;  %p254_p0 = pneg %p490_p13  ;;  %s85_s4 = int_to_ptr.vmem [resolvable:$true] %s84_s4 }
  0x1e   : > { %p312_p2 = scmp.ne.s32.totalorder %s585_s1, %s311_s8  ;;  %p318_p6 = scmp.lt.u32.totalorder %s311_s8, %s585_s1 }
  0x1f   : > { %p498_p1 = pnand %p587_p12, %p254_p0 }
  0x21   : > { %p313_p3 = pneg %p498_p1 }
  0x23   : > { %p314_p4 = pnand %p313_p3, %p312_p2 }
  0x25   : > { %p315_p5 = pneg %p314_p4 }
  0x27   : > { %p320_p7 = pnand %p318_p6, %p315_p5 }
  0x29   : > { %323 = shalt.err (!%p320_p7)
}
  0x2a   : > { %s324_s13 = scalar_lea.vmem %s85_s4, 256  ;;  %p332_p12 = scmp.lt.s32.totalorder %s85_s4, %s85_s4 }
  0x2b   : > { %p325_p10 = scmp.ne.s32.totalorder %s85_s4, %s324_s13  ;;  %p333_p9 = scmp.lt.s32.totalorder %s324_s13, %s324_s13 }
  0x2d   : > { %p327_p11 = pnand %p325_p10, %p313_p3  ;;  %p334_p8 = por %p333_p9, %p332_p12 }
  0x2f   : > { %p328_p0 = pneg %p327_p11 }
  0x31   : > { %p335_p13 = pnand %p334_p8, %p328_p0 }
  0x33   : > { %338 = shalt.err (!%p335_p13)
}
  0x34   : > { %s411_s14 = smov 128   ;;  %s412_s15 = smov 8  }
  0x35   : > { %257 = dma.hbm_to_vmem [thread:$0]  (!%p498_p1), %s585_s1, 256, %s85_s4, [#allocation5], %s411_s14, %s411_s14, %s412_s15  }
  0x36   : > { %p594_p2 = scmp.ne.s32.totalorder %s592_s30, 0 }
  0x37   : > { %p595_p4 = scmp.eq.s32.totalorder (!%p594_p2), %s462_s0, 0 }
  0x38   : > { %100 = sbr.rel (%p594_p2) target bundleno = 103 (0x67), region = 24 }
  0x3f   : > { %386 = dma.done.wait (%p595_p4), [#allocation5], 256   ;;  %p596_p3 = pmov %p595_p4 }
  0x40   : > { %s112_s18 = sand.u32 1, %s399_s20   ;;  %s243_s23 = sshll.u32 %s462_s0, 3  ;;  %vm119_vm0 = vcmask 253952  }
  0x41   : > { %388 = vsyncadd (%p596_p3), [#allocation5], 4294967040  ;;  %s242_s25 = sshll.u32 %s112_s18, 3  ;;  %s116_s26 = sld [smem:[#allocation3 + %s243_s23]] }
  0x42   : > { %s121_s3 = sadd.s32 1, %s243_s23  ;;  %s126_s5 = sadd.s32 2, %s243_s23 }
  0x43   : > { %s122_s4 = sld [smem:[#allocation3 + %s121_s3]]  ;;  %s131_s30 = sadd.s32 3, %s243_s23 }
  0x44   : > { %s127_s6 = sld [smem:[#allocation3 + %s126_s5]]  ;;  %s136_s7 = sadd.s32 4, %s243_s23 }
  0x45   : > { %s132_s8 = sld [smem:[#allocation3 + %s131_s30]]  ;;  %s141_s10 = sadd.s32 5, %s243_s23 }
  0x46   : > { %s137_s9 = sld [smem:[#allocation3 + %s136_s7]]  ;;  %s146_s13 = sadd.s32 6, %s243_s23 }
  0x47   : > { %s117_s11 = scalar_lea.vmem [#allocation4], %s116_s26  ;;  %s142_s12 = sld [smem:[#allocation3 + %s141_s10]] }
  0x48   : > { %v118_v0 = vld [vmem:[%s117_s11] sm:$0x1]  ;;  %s114_s14 = scalar_lea.vmem [#allocation7], %s242_s25  ;;  %s147_s15 = sld [smem:[#allocation3 + %s146_s13]] }
  0x49   : > { %120 = vst.msk [vmem:[%s114_s14] sm:$0x1] %vm119_vm0, %v118_v0  ;;  %s151_s16 = sadd.s32 7, %s243_s23  ;;  %s123_s17 = scalar_lea.vmem [#allocation4], %s122_s4 }
  0x4a   : > { %v124_v1 = vld [vmem:[%s123_s17] sm:$0x1]  ;;  %s128_s3 = scalar_lea.vmem [#allocation4], %s127_s6  ;;  %s152_s5 = sld [smem:[#allocation3 + %s151_s16]] }
  0x4b   : > { %v129_v2 = vld [vmem:[%s128_s3] sm:$0x1]  ;;  %125 = vst.msk [vmem:[%s114_s14 + $0x1] sm:$0x1] %vm119_vm0, %v124_v1  ;;  %s133_s30 = scalar_lea.vmem [#allocation4], %s132_s8  ;;  %s245_s7 = sshll.u32 %s462_s0, 7 }
  0x4c   : > { %130 = vst.msk [vmem:[%s114_s14 + $0x2] sm:$0x1] %vm119_vm0, %v129_v2  ;;  %v134_v3 = vld [vmem:[%s133_s30] sm:$0x1]  ;;  %s138_s26 = scalar_lea.vmem [#allocation4], %s137_s9  ;;  %s170_s23 = sshll.u32 %s114_s14, 4  ;;  %s541_s23 = int_to_ptr.vmem [resolvable:$true] %s170_s23 }
  0x4d   : > { %v139_v4 = vld [vmem:[%s138_s26] sm:$0x1]  ;;  %135 = vst.msk [vmem:[%s114_s14 + $0x3] sm:$0x1] %vm119_vm0, %v134_v3  ;;  %s143_s25 = scalar_lea.vmem [#allocation4], %s142_s12  ;;  %s538_s8 = scalar_lea.hbm %s586_s2, %s245_s7 }
  0x4e   : > { %140 = vst.msk [vmem:[%s114_s14 + $0x4] sm:$0x1] %vm119_vm0, %v139_v4  ;;  %v144_v5 = vld [vmem:[%s143_s25] sm:$0x1]  ;;  %s148_s4 = scalar_lea.vmem [#allocation4], %s147_s15  ;;  %s157_s9 = scalar_lea.sflag [#allocation6], %s112_s18 }
  0x4f   : > { %145 = vst.msk [vmem:[%s114_s14 + $0x5] sm:$0x1] %vm119_vm0, %v144_v5  ;;  %v149_v6 = vld [vmem:[%s148_s4] sm:$0x1]  ;;  %s339_s11 = scalar_lea.vmem %s541_s23, 128  ;;  %p597_p9 = scmp.ne.s32.totalorder %s590_s28, 0 }
  0x50   : > { %150 = vst.msk [vmem:[%s114_s14 + $0x6] sm:$0x1] %vm119_vm0, %v149_v6  ;;  %s153_s0 = scalar_lea.vmem [#allocation4], %s152_s5  ;;  %p340_p8 = scmp.ne.s32.totalorder %s541_s23, %s339_s11 }
  0x51   : > { %v154_v7 = vld [vmem:[%s153_s0] sm:$0x1]  ;;  %s413_s12 = smov [#allocation7]  }
  0x52   : > { %155 = vst.msk [vmem:[%s114_s14 + $0x7] sm:$0x1] %vm119_vm0, %v154_v7  ;;  %p341_p12 = pnand %p340_p8, %p597_p9  ;;  %s343_s13 = sshll.u32 %s413_s12, 4  ;;  %s344_s13 = int_to_ptr.vmem [resolvable:$false] %s343_s13 }
  0x53   : > { %s345_s15 = scalar_lea.vmem %s344_s13, 256  ;;  %p346_p1 = scmp.lt.s32.totalorder %s541_s23, %s344_s13 }
  0x54   : > { %p342_p13 = pneg %p341_p12  ;;  %p347_p5 = scmp.lt.s32.totalorder %s345_s15, %s339_s11 }
  0x56   : > { %p348_p6 = por %p347_p5, %p346_p1 }
  0x58   : > { %p349_p7 = pnand %p348_p6, %p342_p13 }
  0x5a   : > { %352 = shalt.err (!%p349_p7)
}
  0x5b   : > { %s353_s18 = scalar_lea.hbm %s538_s8, 128  ;;  %s357_s17 = scalar_lea.hbm %s586_s2, 256 }
  0x5c   : > { %p354_p10 = scmp.ne.s32.totalorder %s538_s8, %s353_s18  ;;  %p358_p2 = scmp.lt.u32.totalorder %s538_s8, %s586_s2 }
  0x5d   : > { %p359_p4 = scmp.lt.u32.totalorder %s357_s17, %s353_s18  ;;  %p361_p8 = scmp.lt.u32.totalorder %s353_s18, %s538_s8 }
  0x5e   : > { %p355_p11 = pnand %p354_p10, %p597_p9 }
  0x5f   : > { %p360_p3 = por %p359_p4, %p358_p2 }
  0x60   : > { %p356_p0 = pneg %p355_p11 }
  0x61   : > { %p362_p12 = por %p361_p8, %p360_p3 }
  0x63   : > { %p363_p13 = pnand %p362_p12, %p356_p0 }
  0x65   : > { %366 = shalt.err (!%p363_p13)
}
  0x66   : > { %252 = dma.vmem_to_hbm [thread:$0]  (%p597_p9), %s541_s23, 128, %s538_s8, %s157_s9  }
  0x67 PF: > { %p264_p1 = scmp.ge.s32.totalorder %s407_s22, 2  ;;  %s182_s30 = sand.u32 1, %s395_s19  }
  0x68   : > { %p598_p5 = scmp.ne.s32.totalorder %s591_s29, 0  ;;  %s183_s26 = scalar_lea.sflag [#allocation6], %s182_s30 }
  0x6a   : > { %p259_p6 = pnand %p264_p1, %p598_p5 }
  0x6c   : > { %390 = dma.done.wait (!%p259_p6), %s183_s26, 128  }
  0x6d   : > { %392 = vsyncadd (!%p259_p6), %s183_s26, 4294967168  ;;  %p17_p7 = scmp.ge.s32.totalorder %s466_s24, 4   ;;  %s599_s19 = smov %s399_s20 }
  0x6e   : > { %s600_s20 = smov %s403_s21  ;;  %s601_s21 = smov %s477_s27 }
  0x6f   : > { %s602_s22 = smov %s466_s24  ;;  %19 = sbr.rel (!%p17_p7) target bundleno = 16 (0x10), region = 69 }
  0x76   :  { %188 = vsyncpa [#allocation5], 1 }
  0x77   :  { %190 = vsyncpa [#allocation5 + $0x1], 1 }
  0x78   :  { %191 = vsyncpa [#allocation6], 1 }
  0x79   :  { %193 = vsyncpa [#allocation6 + $0x1], 1 }

</bundles_post_ra>
